<compile_context>
chip_gen: v6e
topology: v6e:2x2x1
jax: 0.10.0
libtpu: 0.0.40
codegen_flags: <defaults>
</compile_context>

<pallas_src>
import jax
import jax.numpy as jnp
from jax import lax
from jax.experimental import pallas as pl
from jax.experimental.pallas import tpu as pltpu

NUM_NUMERIC = 12
EMBEDDING_SIZES = [(10, 10), (10, 10)]   # (num_categories, emb_dim) per embedding
HIDDEN = 128


def mymodel_kernel(xT_ref, cat_ref, w1n_ref, w1e_ref, b1_ref, w2_ref, b2_ref,
                   out_ref):
    # xT_ref:  (NUM_NUMERIC, TB)  f32   numeric features, feature-major
    # cat_ref: (2, TB)            i32   both categorical index rows
    # w1n_ref: (HIDDEN, NUM_NUMERIC)    W1 numeric slice, transposed
    # w1e_ref: (HIDDEN, C0+C1)          folded embedding weights, transposed
    # b1_ref:  (HIDDEN, 1), w2_ref: (HIDDEN, 1), b2_ref: (1, 1)
    # out_ref: (1, TB)
    TB = xT_ref.shape[1]
    c0 = EMBEDDING_SIZES[0][0]
    n_oh = w1e_ref.shape[1]                     # c0 + c1

    ids = cat_ref[...]                          # (2, TB) int32
    iota = lax.broadcasted_iota(jnp.int32, (n_oh, TB), 0)
    # Stacked one-hot for both categorical features: rows [0,c0) select cat0,
    # rows [c0, c0+c1) select cat1.  Out-of-range ids give all-zero columns
    # (PyTorch nn.Embedding would raise instead).
    onehot = ((iota == ids[0:1, :]) | (iota == ids[1:2, :] + c0)).astype(jnp.float32)

    # h^T = W1n^T @ x^T + W1e^T @ onehot + b1   -> (HIDDEN, TB)
    h = jnp.dot(w1n_ref[...], xT_ref[...], preferred_element_type=jnp.float32)
    h = h + jnp.dot(w1e_ref[...], onehot, preferred_element_type=jnp.float32)
    h = jnp.maximum(h + b1_ref[...], 0.0)       # ReLU

    # Second layer (128 -> 1): VPU multiply + cross-sublane reduce (lane-dense).
    y = jnp.sum(h * w2_ref[...], axis=0, keepdims=True) + b2_ref[...]   # (1, TB)
    out_ref[...] = jax.nn.sigmoid(y)


def init_params(key):
    (c0, d0), (c1, d1) = EMBEDDING_SIZES
    in_features = NUM_NUMERIC + d0 + d1
    k = jax.random.split(key, 6)
    emb0 = jax.random.normal(k[0], (c0, d0), jnp.float32)
    emb1 = jax.random.normal(k[1], (c1, d1), jnp.float32)
    # nn.Linear-style uniform init, stored as (in, out) for x @ W.
    lim1 = 1.0 / jnp.sqrt(in_features)
    w1 = jax.random.uniform(k[2], (in_features, HIDDEN), jnp.float32, -lim1, lim1)
    b1 = jax.random.uniform(k[3], (HIDDEN,), jnp.float32, -lim1, lim1)
    lim2 = 1.0 / jnp.sqrt(HIDDEN)
    w2 = jax.random.uniform(k[4], (HIDDEN, 1), jnp.float32, -lim2, lim2)
    b2 = jax.random.uniform(k[5], (1,), jnp.float32, -lim2, lim2)
    return emb0, emb1, w1, b1, w2, b2


def _round_up(x, m):
    return (x + m - 1) // m * m


def mymodel_forward(x_numeric, x_categorical, params, tile_b=1024):
    emb0, emb1, w1, b1, w2, b2 = params
    B = x_numeric.shape[0]
    n = NUM_NUMERIC
    (c0, d0), (c1, d1) = EMBEDDING_SIZES

    # Fold embedding tables into layer 1:  onehot @ (emb @ W1_slice).
    p0 = jnp.dot(emb0, w1[n:n + d0, :])                     # (c0, HIDDEN)
    p1 = jnp.dot(emb1, w1[n + d0:n + d0 + d1, :])           # (c1, HIDDEN)
    w1_num_T = w1[:n, :].T                                  # (HIDDEN, n)
    w1_emb_T = jnp.concatenate([p0, p1], axis=0).T          # (HIDDEN, c0+c1)

    # Batch tiling, feature-major (batch on the 128-lane axis), padded to TB.
    tile_b = max(128, _round_up(tile_b, 128))
    TB = min(tile_b, _round_up(B, 128))
    Bp = _round_up(B, TB)
    xT = jnp.zeros((n, Bp), jnp.float32).at[:, :B].set(x_numeric.T)
    catT = jnp.zeros((2, Bp), jnp.int32)
    catT = catT.at[0, :B].set(x_categorical[0].astype(jnp.int32))
    catT = catT.at[1, :B].set(x_categorical[1].astype(jnp.int32))

    grid = (Bp // TB,)
    tiled = lambda rows: pl.BlockSpec((rows, TB), lambda i: (0, i))
    resident = lambda shape: pl.BlockSpec(shape, lambda i: (0, 0))

    out = pl.pallas_call(
        mymodel_kernel,
        out_shape=jax.ShapeDtypeStruct((1, Bp), jnp.float32),
        grid=grid,
        in_specs=[
            tiled(n),                       # xT        (streamed, double-buffered)
            tiled(2),                       # catT      (streamed, lane-dense)
            resident((HIDDEN, n)),          # W1 numeric part (resident)
            resident((HIDDEN, c0 + c1)),    # folded embedding part (resident)
            resident((HIDDEN, 1)),          # b1
            resident((HIDDEN, 1)),          # w2
            resident((1, 1)),               # b2
        ],
        out_specs=pl.BlockSpec((1, TB), lambda i: (0, i)),
        compiler_params=pltpu.CompilerParams(
            dimension_semantics=("parallel",)),
    )(xT, catT, w1_num_T, w1_emb_T,
      b1.reshape(HIDDEN, 1), w2.reshape(HIDDEN, 1), b2.reshape(1, 1))

    # (1, Bp) row-major flat order == (Bp, 1); slice off batch padding.
    return out.reshape(Bp, 1)[:B]


def reference_forward(x_numeric, x_categorical, params):
    emb0, emb1, w1, b1, w2, b2 = params
    e0 = emb0[x_categorical[0]]
    e1 = emb1[x_categorical[1]]
    x = jnp.concatenate([x_numeric, e0, e1], axis=1)
    h = jnp.maximum(x @ w1 + b1, 0.0)
    return jax.nn.sigmoid(h @ w2 + b2)


if __name__ == "__main__":
    key = jax.random.PRNGKey(0)
    kp, kx, kc0, kc1, kx2, kc2, kc3 = jax.random.split(key, 7)
    params = init_params(kp)

    # Small case (single grid step after padding to 128 lanes).
    B = 8
    x_numeric = jax.random.normal(kx, (B, NUM_NUMERIC), jnp.float32)
    x_categorical = [
        jax.random.randint(kc0, (B,), 0, EMBEDDING_SIZES[0][0], jnp.int32),
        jax.random.randint(kc1, (B,), 0, EMBEDDING_SIZES[1][0], jnp.int32),
    ]
    out = jax.block_until_ready(mymodel_forward(x_numeric, x_categorical, params))
    ref = reference_forward(x_numeric, x_categorical, params)
    assert out.shape == (B, 1)
    assert jnp.allclose(out, ref, atol=1e-5, rtol=1e-5)

    # Multi-tile case: exercises the batch grid (3 steps) + padding.
    B2 = 300
    x_numeric2 = jax.random.normal(kx2, (B2, NUM_NUMERIC), jnp.float32)
    x_categorical2 = [
        jax.random.randint(kc2, (B2,), 0, EMBEDDING_SIZES[0][0], jnp.int32),
        jax.random.randint(kc3, (B2,), 0, EMBEDDING_SIZES[1][0], jnp.int32),
    ]
    out2 = jax.block_until_ready(
        mymodel_forward(x_numeric2, x_categorical2, params, tile_b=128))
    ref2 = reference_forward(x_numeric2, x_categorical2, params)
    assert out2.shape == (B2, 1)
    assert jnp.allclose(out2, ref2, atol=1e-5, rtol=1e-5)

    print("KERNEL_OK")
</pallas_src>

<mosaic_0001>
module attributes {stable_mosaic.version = 11 : i64} {
  func.func @mymodel_kernel(%arg0: i32, %arg1: memref<12x128xf32, #tpu.memory_space<vmem>>, %arg2: memref<2x128xi32, #tpu.memory_space<vmem>>, %arg3: memref<128x12xf32, #tpu.memory_space<vmem>>, %arg4: memref<128x20xf32, #tpu.memory_space<vmem>>, %arg5: memref<128x1xf32, #tpu.memory_space<vmem>>, %arg6: memref<128x1xf32, #tpu.memory_space<vmem>>, %arg7: memref<1x1xf32, #tpu.memory_space<vmem>>, %arg8: memref<1x128xf32, #tpu.memory_space<vmem>>) attributes {dimension_semantics = [#tpu.dimension_semantics<parallel>], iteration_bounds = array<i64: 1>, scalar_prefetch = 0 : i64, scratch_operands = 0 : i64, tpu.core_type = #tpu.core_type<tc>, window_params = [{transform_indices = @transform_0, window_bounds = array<i64: 12, 128>}, {transform_indices = @transform_1, window_bounds = array<i64: 2, 128>}, {pipeline_mode = #tpu.pipeline_mode<synchronous>, transform_indices = @transform_2, window_bounds = array<i64: 128, 12>}, {pipeline_mode = #tpu.pipeline_mode<synchronous>, transform_indices = @transform_3, window_bounds = array<i64: 128, 20>}, {pipeline_mode = #tpu.pipeline_mode<synchronous>, transform_indices = @transform_4, window_bounds = array<i64: 128, 1>}, {pipeline_mode = #tpu.pipeline_mode<synchronous>, transform_indices = @transform_5, window_bounds = array<i64: 128, 1>}, {pipeline_mode = #tpu.pipeline_mode<synchronous>, transform_indices = @transform_6, window_bounds = array<i64: 1, 1>}, {transform_indices = @transform_7, window_bounds = array<i64: 1, 128>}]} {
    %c0 = arith.constant 0 : index
    %c0_0 = arith.constant 0 : index
    %0 = vector.load %arg2[%c0, %c0_0] : memref<2x128xi32, #tpu.memory_space<vmem>>, vector<2x128xi32>
    %1 = tpu.iota {dimensions = array<i32: 0>} : vector<20x128xi32>
    %2 = vector.extract_strided_slice %0 {offsets = [0, 0], sizes = [1, 128], strides = [1, 1]} : vector<2x128xi32> to vector<1x128xi32>
    %3 = vector.broadcast %2 : vector<1x128xi32> to vector<20x128xi32>
    %4 = arith.cmpi eq, %1, %3 : vector<20x128xi32>
    %5 = vector.extract_strided_slice %0 {offsets = [1, 0], sizes = [1, 128], strides = [1, 1]} : vector<2x128xi32> to vector<1x128xi32>
    %c10_i32 = arith.constant 10 : i32
    %6 = vector.broadcast %c10_i32 : i32 to vector<1x128xi32>
    %7 = arith.addi %5, %6 : vector<1x128xi32>
    %8 = vector.broadcast %7 : vector<1x128xi32> to vector<20x128xi32>
    %9 = arith.cmpi eq, %1, %8 : vector<20x128xi32>
    %10 = arith.ori %4, %9 : vector<20x128xi1>
    %11 = arith.extui %10 : vector<20x128xi1> to vector<20x128xi32>
    %12 = arith.sitofp %11 : vector<20x128xi32> to vector<20x128xf32>
    %c0_1 = arith.constant 0 : index
    %c0_2 = arith.constant 0 : index
    %13 = vector.load %arg3[%c0_1, %c0_2] : memref<128x12xf32, #tpu.memory_space<vmem>>, vector<128x12xf32>
    %c0_3 = arith.constant 0 : index
    %c0_4 = arith.constant 0 : index
    %14 = vector.load %arg1[%c0_3, %c0_4] : memref<12x128xf32, #tpu.memory_space<vmem>>, vector<12x128xf32>
    %cst = arith.constant dense<0.000000e+00> : vector<128x128xf32>
    %15 = tpu.matmul %13, %14, %cst {dimension_numbers = #tpu.dot_dimension_numbers<[1], [0], [0], [1], [0, 0, 1, 1], [], []>} : vector<128x12xf32>, vector<12x128xf32>, vector<128x128xf32> -> vector<128x128xf32>
    %c0_5 = arith.constant 0 : index
    %c0_6 = arith.constant 0 : index
    %16 = vector.load %arg4[%c0_5, %c0_6] : memref<128x20xf32, #tpu.memory_space<vmem>>, vector<128x20xf32>
    %cst_7 = arith.constant dense<0.000000e+00> : vector<128x128xf32>
    %17 = tpu.matmul %16, %12, %cst_7 {dimension_numbers = #tpu.dot_dimension_numbers<[1], [0], [0], [1], [0, 0, 1, 1], [], []>} : vector<128x20xf32>, vector<20x128xf32>, vector<128x128xf32> -> vector<128x128xf32>
    %18 = arith.addf %15, %17 : vector<128x128xf32>
    %c0_8 = arith.constant 0 : index
    %c0_9 = arith.constant 0 : index
    %19 = vector.load %arg5[%c0_8, %c0_9] : memref<128x1xf32, #tpu.memory_space<vmem>>, vector<128x1xf32>
    %20 = vector.broadcast %19 : vector<128x1xf32> to vector<128x128xf32>
    %21 = arith.addf %18, %20 : vector<128x128xf32>
    %cst_10 = arith.constant 0.000000e+00 : f32
    %22 = vector.broadcast %cst_10 : f32 to vector<128x128xf32>
    %23 = arith.maximumf %21, %22 : vector<128x128xf32>
    %c0_11 = arith.constant 0 : index
    %c0_12 = arith.constant 0 : index
    %24 = vector.load %arg6[%c0_11, %c0_12] : memref<128x1xf32, #tpu.memory_space<vmem>>, vector<128x1xf32>
    %25 = vector.broadcast %24 : vector<128x1xf32> to vector<128x128xf32>
    %26 = arith.mulf %23, %25 : vector<128x128xf32>
    %cst_13 = arith.constant dense<0.000000e+00> : vector<128xf32>
    %27 = vector.multi_reduction <add>, %26, %cst_13 [0] : vector<128x128xf32> to vector<128xf32>
    %28 = vector.shape_cast %27 : vector<128xf32> to vector<1x128xf32>
    %c0_14 = arith.constant 0 : index
    %c0_15 = arith.constant 0 : index
    %29 = vector.load %arg7[%c0_14, %c0_15] : memref<1x1xf32, #tpu.memory_space<vmem>>, vector<1x1xf32>
    %30 = vector.broadcast %29 : vector<1x1xf32> to vector<1x128xf32>
    %31 = arith.addf %28, %30 : vector<1x128xf32>
    %32 = arith.negf %31 : vector<1x128xf32>
    %33 = math.exp %32 : vector<1x128xf32>
    %cst_16 = arith.constant 1.000000e+00 : f32
    %34 = vector.broadcast %cst_16 : f32 to vector<1x128xf32>
    %35 = arith.addf %34, %33 : vector<1x128xf32>
    %36 = arith.divf %34, %35 : vector<1x128xf32>
    %c0_17 = arith.constant 0 : index
    %c0_18 = arith.constant 0 : index
    %37 = vector.load %arg8[%c0_17, %c0_18] : memref<1x128xf32, #tpu.memory_space<vmem>>, vector<1x128xf32>
    tpu.vector_store %arg8[%c0_17, %c0_18], %36 {strides = array<i32>} : memref<1x128xf32, #tpu.memory_space<vmem>>, vector<1x128xf32>,
    return
  }
  func.func @transform_0(%arg0: i32) -> (i32, i32) {
    %c0_i32 = arith.constant 0 : i32
    %c0_i32_0 = arith.constant 0 : i32
    return %c0_i32, %arg0 : i32, i32
  }
  func.func @transform_1(%arg0: i32) -> (i32, i32) {
    %c0_i32 = arith.constant 0 : i32
    %c0_i32_0 = arith.constant 0 : i32
    return %c0_i32, %arg0 : i32, i32
  }
  func.func @transform_2(%arg0: i32) -> (i32, i32) {
    %c0_i32 = arith.constant 0 : i32
    %c0_i32_0 = arith.constant 0 : i32
    %c0_i32_1 = arith.constant 0 : i32
    return %c0_i32, %c0_i32_0 : i32, i32
  }
  func.func @transform_3(%arg0: i32) -> (i32, i32) {
    %c0_i32 = arith.constant 0 : i32
    %c0_i32_0 = arith.constant 0 : i32
    %c0_i32_1 = arith.constant 0 : i32
    return %c0_i32, %c0_i32_0 : i32, i32
  }
  func.func @transform_4(%arg0: i32) -> (i32, i32) {
    %c0_i32 = arith.constant 0 : i32
    %c0_i32_0 = arith.constant 0 : i32
    %c0_i32_1 = arith.constant 0 : i32
    return %c0_i32, %c0_i32_0 : i32, i32
  }
  func.func @transform_5(%arg0: i32) -> (i32, i32) {
    %c0_i32 = arith.constant 0 : i32
    %c0_i32_0 = arith.constant 0 : i32
    %c0_i32_1 = arith.constant 0 : i32
    return %c0_i32, %c0_i32_0 : i32, i32
  }
  func.func @transform_6(%arg0: i32) -> (i32, i32) {
    %c0_i32 = arith.constant 0 : i32
    %c0_i32_0 = arith.constant 0 : i32
    %c0_i32_1 = arith.constant 0 : i32
    return %c0_i32, %c0_i32_0 : i32, i32
  }
  func.func @transform_7(%arg0: i32) -> (i32, i32) {
    %c0_i32 = arith.constant 0 : i32
    %c0_i32_0 = arith.constant 0 : i32
    return %c0_i32, %arg0 : i32, i32
  }
}

</mosaic_0001>

<bundles_post_ra>
// kernel: tpu_custom_call.1
= control target key start
LH: loop header
LB: loop body
LE: loop exit
PB: predicated region body
PF: predicated region fallthrough
CT: control target
= control target key end

     0   :  { %s1282_s0 = inlined_call_operand.vmem [shape: f32[12,128], index: 0, kind: input, shape index: {}]   ;;  %s1283_s1 = inlined_call_operand.vmem [shape: s32[2,128], index: 1, kind: input, shape index: {}]   ;;  %s1284_s2 = inlined_call_operand.vmem [shape: f32[128,12], index: 2, kind: input, shape index: {}]   ;;  %s1285_s3 = inlined_call_operand.vmem [shape: f32[128,20], index: 3, kind: input, shape index: {}]   ;;  %s1286_s4 = inlined_call_operand.vmem [shape: f32[128,1], index: 4, kind: input, shape index: {}]   ;;  %s1287_s5 = inlined_call_operand.vmem [shape: f32[128,1], index: 5, kind: input, shape index: {}]   ;;  %s1288_s6 = inlined_call_operand.<no memory space> [shape: f32[1,1], index: 6, kind: input, shape index: {}]   ;;  %s1289_s7 = inlined_call_operand.hbm [shape: f32[1,128], index: 7, kind: output, shape index: {}]  }
   0x1   :  { %v12_v0 = vstv %s1288_s6 }
   0x2   :  { %13 = vst [vmem:[#allocation2] sm:$0x1] %v12_v0 }
   0x3   :  { %v487_v1 = vld [vmem:[%s1286_s4] sm:$0xff]  ;;  %v489_v2 = vld [vmem:[%s1286_s4 + $0x10] sm:$0xff]  ;;  %v30_v3 = vlaneseq  ;;  %vm141_vm0 = vcmask 1043456   ;;  %v947_v4 = vmov 0   ;;  %vm290_vm1 = vcmask 97280   ;;  %v488_v10 = vld [vmem:[%s1286_s4 + $0x8] sm:$0xff] }
   0x4   :  { %919 = vset.pattern.permute.xlu0 %v947_v4  ;;  %920 = vset.pattern.permute.xlu1 %v947_v4  ;;  %v29_v5 = vld [vmem:[%s1283_s1] sm:$0x3]  ;;  %v75_v8 = vld [vmem:[%s1282_s0 + $0x8] sm:$0xf]  ;;  %v490_v11 = vld [vmem:[%s1286_s4 + $0x18] sm:$0xff]  ;;  %vm92_vm2 = vcmask 162816  }
   0x5   :  { %505 = vperm.xlu0 %919, %v487_v1   ;;  %515 = vperm.xlu1 %920, %v489_v2   ;;  %v1003_v6 = vshrl.u32 %v30_v3, 7  ;;  %v41_v7 = vadd.s32 10, %v29_v5  ;;  %v74_v9 = vld [vmem:[%s1282_s0] sm:$0xff]  ;;  %v59_v18 = vld [vmem:[%s1284_s2 + $0x8] sm:$0xff]  ;;  %v60_v21 = vld [vmem:[%s1284_s2 + $0x10] sm:$0xff]  ;;  %v948_v25 = vmov 0.0  }
   0x6   :  { %887 = vmatprep.subr.msk.mxu1 %vm141_vm0, %v75_v8  ;;  %v58_v12 = vld [vmem:[%s1284_s2] sm:$0xff]  ;;  %v616_v23 = vld [vmem:[%s1287_s5 + $0x8] sm:$0xff]  ;;  %v61_v24 = vld [vmem:[%s1284_s2 + $0x18] sm:$0xff]  ;;  %v949_v30 = vmov 1.0  }
   0x7   :  { %v33_v13 = vadd.s32 16, %v1003_v6  ;;  %v36_v14 = vsub.s32 0, %v1003_v6  ;;  %v44_v15 = vsub.s32 1, %v1003_v6  ;;  %888 = vmatpush3.msk.msra.mxu1 %vm141_vm0, %v75_v8  ;;  %v32_v16 = vadd.s32 8, %v1003_v6  ;;  %891 = vmatprep.mubr.msk.f32.mxu1 %vm290_vm1, %v58_v12  ;;  %v76_v17 = vld [vmem:[%s1285_s3] sm:$0xff]  ;;  %v617_v29 = vld [vmem:[%s1287_s5 + $0x10] sm:$0xff] }
   0x8   :  { %889 = vmatprep.subr.mxu1 %v74_v9  ;;  %863 = vmatprep.mubr.msk.f32.mxu0 %vm92_vm2, %v76_v17  ;;  %v615_v22 = vld [vmem:[%s1287_s5] sm:$0xff]  ;;  %v63_v31 = vld [vmem:[%s1284_s2 + $0x28] sm:$0xff]  ;;  %v64_v33 = vld [vmem:[%s1284_s2 + $0x30] sm:$0xff] }
   0x9   :  { %510 = vperm.xlu0 %919, %v488_v10   ;;  %520 = vperm.xlu1 %920, %v490_v11   ;;  %v37_v19 = vrot.slane %v29_v5, %v36_v14  ;;  %v45_v20 = vrot.slane %v41_v7, %v44_v15  ;;  %v62_v27 = vld [vmem:[%s1284_s2 + $0x20] sm:$0xff]  ;;  %v77_v32 = vld [vmem:[%s1285_s3 + $0x8] sm:$0xff]  ;;  %v78_v35 = vld [vmem:[%s1285_s3 + $0x10] sm:$0xff] }
   0xa   :  { %890 = vmatpush3.msra.mxu1 %v74_v9  ;;  %v491_v28 = vld [vmem:[%s1286_s4 + $0x20] sm:$0xff]  ;;  %v492_v34 = vld [vmem:[%s1286_s4 + $0x28] sm:$0xff]  ;;  %v618_v36 = vld [vmem:[%s1287_s5 + $0x18] sm:$0xff] }
   0xb   :  { %vm40_vm3 = vcmp.eq.s32.totalorder %v33_v13, %v37_v19  ;;  %vm48_vm4 = vcmp.eq.s32.totalorder %v33_v13, %v45_v20  ;;  %vm39_vm5 = vcmp.eq.s32.totalorder %v32_v16, %v37_v19  ;;  %vm47_vm6 = vcmp.eq.s32.totalorder %v32_v16, %v45_v20  ;;  %892 = vmatmul.mubr.msk.f32.vlgmr.msra.gmra.mxu1 %vm290_vm1, %v59_v18  ;;  %v65_v37 = vld [vmem:[%s1284_s2 + $0x38] sm:$0xff]  ;;  %v66_v39 = vld [vmem:[%s1284_s2 + $0x40] sm:$0xff]  ;;  %v493_v40 = vld [vmem:[%s1286_s4 + $0x30] sm:$0xff] }
   0xc   :  { %vm51_vm7 = vmor %vm40_vm3, %vm48_vm4  ;;  %vm38_vm8 = vcmp.eq.s32.totalorder %v1003_v6, %v37_v19  ;;  %vm46_vm9 = vcmp.eq.s32.totalorder %v1003_v6, %v45_v20  ;;  %894 = vmatprep.mubr.msk.f32.mxu1 %vm290_vm1, %v60_v21  ;;  %v79_v38 = vld [vmem:[%s1285_s3 + $0x18] sm:$0xff]  ;;  %v80_v41 = vld [vmem:[%s1285_s3 + $0x20] sm:$0xff] }
   0xd   :  { %633 = vperm.xlu0 %919, %v615_v22   ;;  %v782_v26 = vsel %vm51_vm7, 1.0, %v948_v25  ;;  %638 = vperm.xlu1 %920, %v616_v23   ;;  %vm50_vm10 = vmor %vm39_vm5, %vm47_vm6  ;;  %v619_v42 = vld [vmem:[%s1287_s5 + $0x20] sm:$0xff]  ;;  %v67_v43 = vld [vmem:[%s1284_s2 + $0x48] sm:$0xff] }
   0xe   :  { %857 = vmatprep.subr.msk.mxu0 %vm141_vm0, %v782_v26  ;;  %vm49_vm11 = vmor %vm38_vm8, %vm46_vm9  ;;  %v81_v44 = vld [vmem:[%s1285_s3 + $0x28] sm:$0xff]  ;;  %v68_v45 = vld [vmem:[%s1284_s2 + $0x50] sm:$0xff] }
   0xf   :  { %858 = vmatpush3.msk.msra.mxu0 %vm141_vm0, %v782_v26  ;;  %895 = vmatmul.mubr.msk.f32.gmra.mxu1 %vm290_vm1, %v61_v24  ;;  %v494_v46 = vld [vmem:[%s1286_s4 + $0x38] sm:$0xff]  ;;  %v82_v47 = vld [vmem:[%s1285_s3 + $0x30] sm:$0xff]  ;;  %v620_v48 = vld [vmem:[%s1287_s5 + $0x28] sm:$0xff] }
  0x10   :  { %859 = vmatprep.subr.msk.mxu0 %vm50_vm10, %v949_v30  ;;  %897 = vmatprep.mubr.msk.f32.mxu1 %vm290_vm1, %v62_v27 }
  0x11   :  { %525 = vperm.xlu0 %919, %v491_v28   ;;  %860 = vmatpush3.msk.msra.mxu0 %vm50_vm10, %v949_v30 }
  0x12   :  { %861 = vmatprep.subr.msk.mxu0 %vm49_vm11, %v949_v30  ;;  %643 = vperm.xlu1 %920, %v617_v29  }
  0x13   :  { %862 = vmatpush3.msk.msra.mxu0 %vm49_vm11, %v949_v30  ;;  %898 = vmatmul.mubr.msk.f32.gmra.mxu1 %vm290_vm1, %v63_v31 }
  0x14   :  { %864 = vmatmul.mubr.msk.f32.vlgmr.msra.gmra.mxu0 %vm92_vm2, %v77_v32  ;;  %900 = vmatprep.mubr.msk.f32.mxu1 %vm290_vm1, %v64_v33 }
  0x15   :  { %530 = vperm.xlu0 %919, %v492_v34   ;;  %866 = vmatprep.mubr.msk.f32.mxu0 %vm92_vm2, %v78_v35 }
  0x16   :  { %648 = vperm.xlu1 %920, %v618_v36  }
  0x17   :  { %901 = vmatmul.mubr.msk.f32.gmra.mxu1 %vm290_vm1, %v65_v37 }
  0x18   :  { %867 = vmatmul.mubr.msk.f32.gmra.mxu0 %vm92_vm2, %v79_v38  ;;  %903 = vmatprep.mubr.msk.f32.mxu1 %vm290_vm1, %v66_v39 }
  0x19   :  { %535 = vperm.xlu0 %919, %v493_v40   ;;  %869 = vmatprep.mubr.msk.f32.mxu0 %vm92_vm2, %v80_v41 }
  0x1a   :  { %653 = vperm.xlu1 %920, %v619_v42  }
  0x1b   :  { %904 = vmatmul.mubr.msk.f32.gmra.mxu1 %vm290_vm1, %v67_v43 }
  0x1c   :  { %14 = vsyncpa [#allocation4], 0  ;;  %870 = vmatmul.mubr.msk.f32.gmra.mxu0 %vm92_vm2, %v81_v44  ;;  %906 = vmatprep.mubr.msk.f32.mxu1 %vm290_vm1, %v68_v45  ;;  %v69_v49 = vld [vmem:[%s1284_s2 + $0x58] sm:$0xff]  ;;  %v70_v51 = vld [vmem:[%s1284_s2 + $0x60] sm:$0xff] }
  0x1d   :  { %540 = vperm.xlu0 %919, %v494_v46   ;;  %872 = vmatprep.mubr.msk.f32.mxu0 %vm92_vm2, %v82_v47  ;;  %v83_v50 = vld [vmem:[%s1285_s3 + $0x38] sm:$0xff]  ;;  %v495_v52 = vld [vmem:[%s1286_s4 + $0x40] sm:$0xff]  ;;  %v621_v54 = vld [vmem:[%s1287_s5 + $0x30] sm:$0xff] }
  0x1e   :  { %658 = vperm.xlu1 %920, %v620_v48   ;;  %v84_v53 = vld [vmem:[%s1285_s3 + $0x40] sm:$0xff]  ;;  %v71_v55 = vld [vmem:[%s1284_s2 + $0x68] sm:$0xff]  ;;  %v72_v57 = vld [vmem:[%s1284_s2 + $0x70] sm:$0xff] }
  0x1f   :  { %907 = vmatmul.mubr.msk.f32.gmra.mxu1 %vm290_vm1, %v69_v49  ;;  %v85_v56 = vld [vmem:[%s1285_s3 + $0x48] sm:$0xff]  ;;  %v86_v59 = vld [vmem:[%s1285_s3 + $0x50] sm:$0xff]  ;;  %v622_v60 = vld [vmem:[%s1287_s5 + $0x38] sm:$0xff] }
  0x20   :  { %873 = vmatmul.mubr.msk.f32.gmra.mxu0 %vm92_vm2, %v83_v50  ;;  %909 = vmatprep.mubr.msk.f32.mxu1 %vm290_vm1, %v70_v51  ;;  %v496_v58 = vld [vmem:[%s1286_s4 + $0x48] sm:$0xff]  ;;  %v73_v61 = vld [vmem:[%s1284_s2 + $0x78] sm:$0xff]  ;;  %v497_v63 = vld [vmem:[%s1286_s4 + $0x50] sm:$0xff] }
  0x21   :  { %545 = vperm.xlu0 %919, %v495_v52   ;;  %875 = vmatprep.mubr.msk.f32.mxu0 %vm92_vm2, %v84_v53  ;;  %v87_v62 = vld [vmem:[%s1285_s3 + $0x58] sm:$0xff]  ;;  %v88_v0 = vld [vmem:[%s1285_s3 + $0x60] sm:$0xff]  ;;  %v89_v2 = vld [vmem:[%s1285_s3 + $0x68] sm:$0xff] }
  0x22   :  { %663 = vperm.xlu1 %920, %v621_v54   ;;  %v623_v1 = vld [vmem:[%s1287_s5 + $0x40] sm:$0xff]  ;;  %v498_v3 = vld [vmem:[%s1286_s4 + $0x58] sm:$0xff]  ;;  %v90_v4 = vld [vmem:[%s1285_s3 + $0x70] sm:$0xff] }
  0x23   :  { %910 = vmatmul.mubr.msk.f32.gmra.mxu1 %vm290_vm1, %v71_v55  ;;  %v624_v5 = vld [vmem:[%s1287_s5 + $0x48] sm:$0xff]  ;;  %v91_v7 = vld [vmem:[%s1285_s3 + $0x78] sm:$0xff]  ;;  %v499_v8 = vld [vmem:[%s1286_s4 + $0x60] sm:$0xff] }
  0x24   :  { %876 = vmatmul.mubr.msk.f32.gmra.mxu0 %vm92_vm2, %v85_v56  ;;  %912 = vmatprep.mubr.msk.f32.mxu1 %vm290_vm1, %v72_v57  ;;  %v625_v9 = vld [vmem:[%s1287_s5 + $0x50] sm:$0xff]  ;;  %v500_v10 = vld [vmem:[%s1286_s4 + $0x68] sm:$0xff]  ;;  %v626_v11 = vld [vmem:[%s1287_s5 + $0x58] sm:$0xff] }
  0x25   :  { %550 = vperm.xlu0 %919, %v496_v58   ;;  %878 = vmatprep.mubr.msk.f32.mxu0 %vm92_vm2, %v86_v59  ;;  %v501_v12 = vld [vmem:[%s1286_s4 + $0x70] sm:$0xff]  ;;  %v627_v13 = vld [vmem:[%s1287_s5 + $0x60] sm:$0xff]  ;;  %v502_v15 = vld [vmem:[%s1286_s4 + $0x78] sm:$0xff]  ;;  %s950_s4 = smov [#allocation3]  }
  0x26   :  { %668 = vperm.xlu1 %920, %v622_v60   ;;  %v628_v16 = vld [vmem:[%s1287_s5 + $0x68] sm:$0xff]  ;;  %v629_v17 = vld [vmem:[%s1287_s5 + $0x70] sm:$0xff]  ;;  %v630_v18 = vld [vmem:[%s1287_s5 + $0x78] sm:$0xff]  ;;  %s772_s5 = sshll.u32 %s950_s4, 4  ;;  %s773_s5 = int_to_ptr.vmem [resolvable:$true] %s772_s5 }
  0x27   :  { %913 = vmatmul.mubr.msk.f32.gmra.mxu1 %vm290_vm1, %v73_v61  ;;  %v748_v19 = vld [vmem:[#allocation2] sm:$0x1]  ;;  %s925_s27 = scalar_lea.vmem %s773_s5, 16  ;;  %s929_s28 = scalar_lea.vmem %s773_s5, 32 }
  0x28   :  { %879 = vmatmul.mubr.msk.f32.gmra.mxu0 %vm92_vm2, %v87_v62  ;;  %p926_p0 = scmp.ne.s32.totalorder %s773_s5, %s925_s27  ;;  %p930_p1 = scmp.lt.s32.totalorder %s773_s5, %s773_s5 }
  0x29   :  { %555 = vperm.xlu0 %919, %v497_v63   ;;  %881 = vmatprep.mubr.msk.f32.mxu0 %vm92_vm2, %v88_v0  ;;  %p931_p2 = scmp.lt.s32.totalorder %s929_s28, %s925_s27 }
  0x2a   :  { %673 = vperm.xlu1 %920, %v623_v1  }
  0x2b   :  { %p932_p3 = por %p931_p2, %p930_p1 }
  0x2c   :  { %882 = vmatmul.mubr.msk.f32.gmra.mxu0 %vm92_vm2, %v89_v2 }
  0x2d   :  { %560 = vperm.xlu0 %919, %v498_v3   ;;  %884 = vmatprep.mubr.msk.f32.mxu0 %vm92_vm2, %v90_v4  ;;  %p933_p4 = pnand %p932_p3, %p926_p0 }
  0x2e   :  { %678 = vperm.xlu1 %920, %v624_v5  }
  0x30   :  { %885 = vmatmul.mubr.msk.f32.gmra.mxu0 %vm92_vm2, %v91_v7 }
  0x31   :  { %565 = vperm.xlu0 %919, %v499_v8  }
  0x32   :  { %683 = vperm.xlu1 %920, %v625_v9  }
  0x35   :  { %570 = vperm.xlu0 %919, %v500_v10  }
  0x36   :  { %688 = vperm.xlu1 %920, %v626_v11  }
  0x39   :  { %575 = vperm.xlu0 %919, %v501_v12  }
  0x3a   :  { %693 = vperm.xlu1 %920, %v627_v13  }
  0x3d   :  { %580 = vperm.xlu0 %919, %v502_v15  }
  0x3e   :  { %698 = vperm.xlu1 %920, %v628_v16  }
  0x41   :  { %703 = vperm.xlu0 %919, %v629_v17  }
  0x42   :  { %708 = vperm.xlu1 %920, %v630_v18  }
  0x45   :  { %751 = vperm.xlu0 %919, %v748_v19  }
  0x80   :  { %v506_v20 = vpop.permute.xlu0 %505  ;;  %v516_v21 = vpop.permute.xlu1 %515 }
  0x84   :  { %v511_v22 = vpop.permute.xlu0 %510  ;;  %v521_v23 = vpop.permute.xlu1 %520 }
  0x88   :  { %v634_v24 = vpop.permute.xlu0 %633  ;;  %v639_v25 = vpop.permute.xlu1 %638 }
  0x8c   :  { %v526_v26 = vpop.permute.xlu0 %525 }
  0x8d   :  { %v644_v27 = vpop.permute.xlu1 %643 }
  0x90   :  { %v531_v28 = vpop.permute.xlu0 %530 }
  0x91   :  { %v649_v29 = vpop.permute.xlu1 %648 }
  0x94   :  { %v1241_v30 = vpop.permute.xlu0 %535 }
  0x95   :  { %v1243_v31 = vpop.permute.xlu1 %653 }
  0x98   :  { %v541_v32 = vpop.permute.xlu0 %540 }
  0x99   :  { %v1245_v33 = vpop.permute.xlu1 %658 }
  0x9c   :  { %v1247_v34 = vpop.permute.xlu0 %545 }
  0x9d   :  { %v1249_v35 = vpop.permute.xlu1 %663 }
  0xa0   :  { %v1251_v37 = vpop.permute.xlu0 %550 }
  0xa1   :  { %v1253_v40 = vpop.permute.xlu1 %668 }
  0xa4   :  { %v1255_v42 = vpop.permute.xlu0 %555 }
  0xa5   :  { %v1257_v48 = vpop.permute.xlu1 %673 }
  0xa8   :  { %v1259_v53 = vpop.permute.xlu0 %560 }
  0xa9   :  { %v1261_v0 = vpop.permute.xlu1 %678 }
  0xac   :  { %v1263_v7 = vpop.permute.xlu0 %565 }
  0xcb   :  { %v893_v36 = vpop.f32.mrf.mxu1 }
  0xcd   :  { %v408_v38 = vpop.f32.mrf.mxu1 }
  0xcf   :  { %v896_v39 = vpop.f32.mrf.mxu1 }
  0xd1   :  { %v418_v41 = vpop.f32.mrf.mxu1 }
  0xd3   :  { %v899_v43 = vpop.f32.mrf.mxu1 }
  0xd4   :  { %v865_v44 = vpop.f32.mrf.mxu0 }
  0xd5   :  { %v414_v45 = vadd.f32 %v893_v36, %v865_v44  ;;  %v428_v46 = vpop.f32.mrf.mxu1 }
  0xd6   :  { %v211_v47 = vpop.f32.mrf.mxu0 }
  0xd7   :  { %v584_v49 = vadd.f32 %v511_v22, %v414_v45  ;;  %v409_v50 = vadd.f32 %v408_v38, %v211_v47  ;;  %v902_v51 = vpop.f32.mrf.mxu1 }
  0xd8   :  { %v868_v52 = vpop.f32.mrf.mxu0 }
  0xd9   :  { %v583_v54 = vadd.f32 %v506_v20, %v409_v50  ;;  %v424_v55 = vadd.f32 %v896_v39, %v868_v52  ;;  %v438_v56 = vpop.f32.mrf.mxu1  ;;  %v600_v58 = vmax.f32 %v584_v49, 0.0 }
  0xda   :  { %v221_v57 = vpop.f32.mrf.mxu0 }
  0xdb   :  { %v599_v59 = vmax.f32 %v583_v54, 0.0  ;;  %v586_v60 = vadd.f32 %v521_v23, %v424_v55  ;;  %v419_v61 = vadd.f32 %v418_v41, %v221_v57  ;;  %v905_v62 = vpop.f32.mrf.mxu1  ;;  %v712_v8 = vmul.f32 %v639_v25, %v600_v58  ;;  %v684_v23 = vpop.permute.xlu1 %683 }
  0xdc   :  { %v871_v63 = vpop.f32.mrf.mxu0 }
  0xdd   :  { %v711_v1 = vmul.f32 %v634_v24, %v599_v59  ;;  %v585_v2 = vadd.f32 %v516_v21, %v419_v61  ;;  %v434_v3 = vadd.f32 %v899_v43, %v871_v63  ;;  %v448_v4 = vpop.f32.mrf.mxu1  ;;  %v602_v9 = vmax.f32 %v586_v60, 0.0  ;;  %v571_v43 = vpop.permute.xlu0 %570 }
  0xde   :  { %v231_v5 = vpop.f32.mrf.mxu0 }
  0xdf   :  { %v601_v10 = vmax.f32 %v585_v2, 0.0  ;;  %v908_v11 = vpop.f32.mrf.mxu1  ;;  %v588_v12 = vadd.f32 %v531_v28, %v434_v3  ;;  %v429_v13 = vadd.f32 %v428_v46, %v231_v5  ;;  %v727_v16 = vadd.f32 %v712_v8, %v711_v1 }
  0xe0   :  { %v874_v15 = vpop.f32.mrf.mxu0  ;;  %v714_v21 = vmul.f32 %v649_v29, %v602_v9 }
  0xe1   :  { %v713_v17 = vmul.f32 %v644_v27, %v601_v10  ;;  %v444_v18 = vadd.f32 %v902_v51, %v874_v15  ;;  %v587_v19 = vadd.f32 %v526_v26, %v429_v13  ;;  %v458_v22 = vpop.f32.mrf.mxu1  ;;  %v604_v38 = vmax.f32 %v588_v12, 0.0  ;;  %v576_v59 = vpop.permute.xlu0 %575 }
  0xe2   :  { %v241_v20 = vpop.f32.mrf.mxu0 }
  0xe3   :  { %v728_v24 = vadd.f32 %v727_v16, %v713_v17  ;;  %v439_v36 = vadd.f32 %v438_v56, %v241_v20  ;;  %v603_v39 = vmax.f32 %v587_v19, 0.0  ;;  %v590_v41 = vadd.f32 %v541_v32, %v444_v18  ;;  %v911_v47 = vpop.f32.mrf.mxu1  ;;  %v689_v32 = vpop.permute.xlu1 %688 }
  0xe4   :  { %v877_v25 = vpop.f32.mrf.mxu0  ;;  %v716_v50 = vmul.f32 %v1245_v33, %v604_v38 }
  0xe5   :  { %v729_v44 = vadd.f32 %v728_v24, %v714_v21  ;;  %v589_v28 = vadd.f32 %v1241_v30, %v439_v36  ;;  %v454_v45 = vadd.f32 %v905_v62, %v877_v25  ;;  %v715_v46 = vmul.f32 %v1243_v31, %v603_v39  ;;  %v468_v31 = vpop.f32.mrf.mxu1  ;;  %v581_v16 = vpop.permute.xlu0 %580 }
  0xe6   :  { %v251_v27 = vpop.f32.mrf.mxu0  ;;  %v606_v51 = vmax.f32 %v590_v41, 0.0 }
  0xe7   :  { %v605_v26 = vmax.f32 %v589_v28, 0.0  ;;  %v449_v49 = vadd.f32 %v448_v4, %v251_v27  ;;  %v730_v29 = vadd.f32 %v729_v44, %v715_v46  ;;  %v592_v52 = vadd.f32 %v1251_v37, %v454_v45  ;;  %v914_v5 = vpop.f32.mrf.mxu1  ;;  %v694_v8 = vpop.permute.xlu1 %693 }
  0xe8   :  { %v880_v54 = vpop.f32.mrf.mxu0  ;;  %v718_v62 = vmul.f32 %v1253_v40, %v606_v51 }
  0xe9   :  { %v717_v55 = vmul.f32 %v1249_v35, %v605_v26  ;;  %v591_v56 = vadd.f32 %v1247_v34, %v449_v49  ;;  %v464_v30 = vadd.f32 %v908_v11, %v880_v54  ;;  %v731_v57 = vadd.f32 %v730_v29, %v716_v50  ;;  %v704_v44 = vpop.permute.xlu0 %703 }
  0xea   :  { %v261_v58 = vpop.f32.mrf.mxu0  ;;  %v608_v63 = vmax.f32 %v592_v52, 0.0 }
  0xeb   :  { %v607_v60 = vmax.f32 %v591_v56, 0.0  ;;  %v459_v61 = vadd.f32 %v458_v22, %v261_v58  ;;  %v732_v33 = vadd.f32 %v731_v57, %v717_v55  ;;  %v594_v1 = vadd.f32 %v1259_v53, %v464_v30  ;;  %v699_v39 = vpop.permute.xlu1 %698 }
  0xec   :  { %v883_v37 = vpop.f32.mrf.mxu0  ;;  %v720_v11 = vmul.f32 %v1261_v0, %v608_v63 }
  0xed   :  { %v719_v2 = vmul.f32 %v1257_v48, %v607_v60  ;;  %v593_v35 = vadd.f32 %v1255_v42, %v459_v61  ;;  %v474_v3 = vadd.f32 %v911_v47, %v883_v37  ;;  %v733_v34 = vadd.f32 %v732_v33, %v718_v62  ;;  %v478_v42 = vpop.f32.mrf.mxu1  ;;  %v752_v54 = vpop.permute.xlu0 %751 }
  0xee   :  { %v271_v4 = vpop.f32.mrf.mxu0  ;;  %v610_v40 = vmax.f32 %v594_v1, 0.0  ;;  %v757_v55 = vrot.slane %v752_v54, %v36_v14 }
  0xef   :  { %v609_v9 = vmax.f32 %v593_v35, 0.0  ;;  %v469_v10 = vadd.f32 %v468_v31, %v271_v4  ;;  %v734_v12 = vadd.f32 %v733_v34, %v719_v2  ;;  %v596_v13 = vadd.f32 %v571_v43, %v474_v3  ;;  %v709_v27 = vpop.permute.xlu1 %708 }
  0xf0   :  { %v886_v15 = vpop.f32.mrf.mxu0  ;;  %v722_v21 = vmul.f32 %v689_v32, %v610_v40 }
  0xf1   :  { %v721_v53 = vmul.f32 %v684_v23, %v609_v9  ;;  %v595_v17 = vadd.f32 %v1263_v7, %v469_v10  ;;  %v484_v48 = vadd.f32 %v914_v5, %v886_v15  ;;  %v735_v18 = vadd.f32 %v734_v12, %v720_v11 }
  0xf2   :  { %v281_v19 = vpop.f32.mrf.mxu0  ;;  %v612_v36 = vmax.f32 %v596_v13, 0.0 }
  0xf3   :  { %v611_v20 = vmax.f32 %v595_v17, 0.0  ;;  %v479_v22 = vadd.f32 %v478_v42, %v281_v19  ;;  %v736_v24 = vadd.f32 %v735_v18, %v721_v53  ;;  %v598_v38 = vadd.f32 %v581_v16, %v484_v48 }
  0xf4   :  { %v724_v28 = vmul.f32 %v699_v39, %v612_v36 }
  0xf5   :  { %v723_v0 = vmul.f32 %v694_v8, %v611_v20  ;;  %v597_v41 = vadd.f32 %v576_v59, %v479_v22  ;;  %v737_v25 = vadd.f32 %v736_v24, %v722_v21  ;;  %v614_v45 = vmax.f32 %v598_v38, 0.0 }
  0xf7   :  { %v613_v43 = vmax.f32 %v597_v41, 0.0  ;;  %v738_v23 = vadd.f32 %v737_v25, %v723_v0  ;;  %v726_v47 = vmul.f32 %v709_v27, %v614_v45 }
  0xf9   :  { %v725_v7 = vmul.f32 %v704_v44, %v613_v43  ;;  %v739_v46 = vadd.f32 %v738_v23, %v724_v28 }
  0xfb   :  { %v740_v26 = vadd.f32 %v739_v46, %v725_v7 }
  0xfd   :  { %v741_v49 = vadd.f32 %v740_v26, %v726_v47 }
  0xff   :  { %v742_v50 = vrot.slane %v741_v49, 4 }
 0x101   :  { %v743_v29 = vadd.f32 %v742_v50, %v741_v49 }
 0x103   :  { %v744_v51 = vrot.slane %v743_v29, 2 }
 0x105   :  { %v745_v52 = vadd.f32 %v744_v51, %v743_v29 }
 0x107   :  { %v746_v32 = vrot.slane %v745_v52, 1 }
 0x109   :  { %v747_v56 = vadd.f32 %v746_v32, %v745_v52 }
 0x10b   :  { %v758_v30 = vadd.f32 %v757_v55, %v747_v56 }
 0x10d   :  { %v819_v57 = vmul.f32 -1.442695, %v758_v30 }
 0x10f   :  { %921 = vpow2.f32 %v819_v57 }
 0x11c   :  { %v922_v58 = vpop.eup %921 }
 0x11d   :  { %v762_v31 = vadd.f32 1.0, %v922_v58 }
 0x11f   :  { %923 = vrcp.f32 %v762_v31 }
 0x12c   :  { %v924_v59 = vpop.eup %923 }
 0x12d   :  { %765 = vst [vmem:[#allocation3] sm:$0x1] %v924_v59 }
 0x12e   :  { %936 = shalt.err (!%p933_p4)
}
 0x12f   :  { %775 = dma.vmem_to_hbm [thread:$0]  %s773_s5, 16, %s1289_s7, [#allocation4]  }
 0x130   :  { %945 = dma.done.wait [#allocation4], 16  }
 0x131   :  { %946 = vsyncadd [#allocation4], 4294967280 }
 0x132   :  { %779 = vsyncpa [#allocation4], 1 }

</bundles_post_ra>
